<compile_context>
chip_gen: v7x
topology: tpu7x:2x2x1
jax: 0.10.0
libtpu: 0.0.40
codegen_flags: <defaults>
</compile_context>

<pallas_src>
import jax
import jax.numpy as jnp
from jax.experimental import pallas as pl
from jax.experimental.pallas import tpu as pltpu

EPS = 1e-5


# ----------------------------------------------------------------------------
# Tile / VMEM planning
# ----------------------------------------------------------------------------

def _vmem_capacity_bytes():
    """Per-generation VMEM capacity (v5e/v6e: 128 MiB, v7x: 64 MiB per TC)."""
    try:
        cap = int(pltpu.get_tpu_info().vmem_capacity_bytes)
        return min(cap, 128 << 20)
    except Exception:
        return 64 << 20  # conservative fallback = v7x per-TensorCore VMEM


def _pick_tile(dim, pref):
    """Largest divisor of `dim` that is <= pref and a multiple of 128 (lane
    alignment / (8,128) BlockSpec rule); falls back to the full dimension
    (full-extent blocks are always legal), e.g. at small test shapes."""
    pref = min(pref, dim)
    for t in range(pref - pref % 128, 0, -128):
        if dim % t == 0:
            return t
    return dim


def _shrink_tile(dim, t):
    nt = _pick_tile(dim, t // 2)
    return nt if nt < t else None


def _pick_tn(N, pref):
    tn = _pick_tile(N, pref)
    # Keep >= 2 feature tiles when possible so the "parallel" N axis can be
    # sharded across v7x's two TensorCores (megacore on other generations).
    if N // tn < 2:
        smaller = _shrink_tile(N, tn)
        if smaller is not None and smaller % 128 == 0:
            tn = smaller
    return tn


def _plan_stage(B_pad, K, N, in_itemsize, out_itemsize, tn_pref, tk_pref):
    """Choose (tn, tk, resident_x, weight_buffers, vmem_limit_bytes)."""
    cap = _vmem_capacity_bytes()
    budget = max(cap - (12 << 20), 8 << 20)   # headroom for compiler temps

    tn = _pick_tn(N, tn_pref)
    tk = _pick_tile(K, tk_pref)

    def w_buffers(tk_):
        # Deeper weight pipeline when the per-step matmul (only B_pad rows) is
        # too small to hide the weight-tile DMA; only useful with >= 3 K steps.
        return 3 if (B_pad <= 256 and K // tk_ >= 3) else 2

    # Cap multi-buffered weight tiles (~24 MiB), sized against v7x's 64 MiB.
    while w_buffers(tk) * tk * tn * in_itemsize > (24 << 20):
        nt = _shrink_tile(K, tk)
        if nt is None:
            break
        tk = nt

    def need(resident, tk_, tn_):
        x_b = 2 * B_pad * (K if resident else tk_) * in_itemsize
        w_b = w_buffers(tk_) * tk_ * tn_ * in_itemsize
        gb_b = 2 * 2 * tn_ * 4                 # gamma / beta tiles
        out_b = 2 * B_pad * tn_ * out_itemsize
        acc_b = B_pad * tn_ * 4                # f32 accumulator scratch
        return x_b + w_b + gb_b + out_b + acc_b

    while True:
        resident = need(True, tk, tn) <= budget
        if resident or need(False, tk, tn) <= budget:
            break
        nt = _shrink_tile(K, tk)
        if nt is not None:
            tk = nt
            continue
        nn = _shrink_tile(N, tn)
        if nn is not None:
            tn = nn
            continue
        # TODO(synk): implement two-pass sum / sum-of-squares BN over B tiles
        # for batches that cannot stay resident in VMEM.
        raise ValueError(
            f"NonLinearNeck kernel: batch {B_pad} x K={K} too large for the "
            f"VMEM budget ({budget} bytes); B-tiled BatchNorm not implemented.")

    used = need(resident, tk, tn)
    vmem_limit = int(min(max(used + used // 2, 8 << 20), cap - (4 << 20)))
    return tn, tk, resident, w_buffers(tk), vmem_limit


# ----------------------------------------------------------------------------
# Kernel
# ----------------------------------------------------------------------------

def _make_kernel(*, resident_x, tk, b_real, b_pad):
    """One stage: (B, tk) @ (tk, tn) accumulated over the K grid axis, then a
    fused BatchNorm1d (training-mode batch stats) + ReLU epilogue on the last
    K step.  The full (padded) batch lives in every block, so per-feature
    batch statistics are exact despite feature (N) tiling; padded rows are
    masked out of the statistics."""

    def kernel(x_ref, w_ref, g_ref, be_ref, o_ref, acc_ref):
        k = pl.program_id(1)

        @pl.when(k == 0)
        def _init():
            acc_ref[...] = jnp.zeros_like(acc_ref)

        if resident_x:
            if x_ref.shape[1] == tk:          # single K step: no slicing
                x_blk = x_ref[...]
            else:
                start = pl.multiple_of(k * tk, tk)
                x_blk = x_ref[:, pl.ds(start, tk)]
        else:
            x_blk = x_ref[...]

        acc_ref[...] += jnp.dot(x_blk, w_ref[...],
                                preferred_element_type=jnp.float32)

        @pl.when(k == pl.num_programs(1) - 1)
        def _epilogue():
            h = acc_ref[...]                                  # (B_pad, tn) f32
            if b_pad == b_real:
                mu = jnp.mean(h, axis=0, keepdims=True)
                d = h - mu
                var = jnp.mean(d * d, axis=0, keepdims=True)  # biased (1/N)
                mask = None
            else:
                row = jax.lax.broadcasted_iota(jnp.int32, h.shape, 0)
                mask = row < b_real
                inv_b = 1.0 / float(b_real)
                mu = jnp.sum(jnp.where(mask, h, 0.0), axis=0,
                             keepdims=True) * inv_b
                d = jnp.where(mask, h - mu, 0.0)
                var = jnp.sum(d * d, axis=0, keepdims=True) * inv_b
            # Fused BN: one FMA per element (scale/shift precomputed per feat).
            scale = g_ref[...] * jax.lax.rsqrt(var + EPS)
            shift = be_ref[...] - mu * scale
            y = jnp.maximum(h * scale + shift, 0.0)
            if mask is not None:
                y = jnp.where(mask, y, 0.0)                   # clean pad rows
            o_ref[...] = y.astype(o_ref.dtype)

    return kernel


def _linear_bn_relu(x, w, gamma, beta, *, out_dtype, b_real, tn_pref, tk_pref):
    B_pad, K = x.shape
    Kw, N = w.shape
    assert K == Kw
    in_itemsize = jnp.dtype(x.dtype).itemsize
    out_itemsize = jnp.dtype(out_dtype).itemsize

    tn, tk, resident, wbuf, vmem_limit = _plan_stage(
        B_pad, K, N, in_itemsize, out_itemsize, tn_pref, tk_pref)
    grid = (N // tn, K // tk)

    if resident:
        # Constant block index -> x DMA'd once and kept resident for the whole
        # grid (no re-streaming per N tile); sliced inside the kernel.
        x_spec = pl.BlockSpec((B_pad, K), lambda n, k: (0, 0))
    else:
        x_spec = pl.BlockSpec((B_pad, tk), lambda n, k: (0, k))

    w_spec_kwargs = {}
    if wbuf != 2:
        # 3-deep weight pipeline to hide weight DMA behind a small-B matmul.
        w_spec_kwargs["pipeline_mode"] = pl.Buffered(wbuf)
    w_spec = pl.BlockSpec((tk, tn), lambda n, k: (k, n), **w_spec_kwargs)

    kernel = _make_kernel(resident_x=resident, tk=tk,
                          b_real=b_real, b_pad=B_pad)

    return pl.pallas_call(
        kernel,
        out_shape=jax.ShapeDtypeStruct((B_pad, N), out_dtype),
        grid_spec=pltpu.PrefetchScalarGridSpec(
            num_scalar_prefetch=0,
            grid=grid,
            in_specs=[
                x_spec,                                       # activations
                w_spec,                                       # weights
                pl.BlockSpec((1, tn), lambda n, k: (0, n)),   # gamma
                pl.BlockSpec((1, tn), lambda n, k: (0, n)),   # beta
            ],
            out_specs=pl.BlockSpec((B_pad, tn), lambda n, k: (0, n)),
            scratch_shapes=[pltpu.VMEM((B_pad, tn), jnp.float32)],
        ),
        compiler_params=pltpu.CompilerParams(
            # N tiles split across TensorCores (v7x megacore); K is a reduction.
            dimension_semantics=("parallel", "arbitrary"),
            vmem_limit_bytes=vmem_limit,
        ),
    )(x, w, gamma, beta)


# ----------------------------------------------------------------------------
# Public wrapper
# ----------------------------------------------------------------------------

def prepare_params(params, compute_dtype=jnp.float32):
    """One-time weight conversion (e.g. to bf16 for v5e/v6e/v7x MXU).  Do this
    at param-load time so no per-call astype pass re-reads the weights from
    HBM.  BN affine params stay f32 (the BN/ReLU epilogue is always f32)."""
    p = dict(params)
    p["w1t"] = params["w1t"].astype(compute_dtype)
    p["w2t"] = params["w2t"].astype(compute_dtype)
    return p


def _sublane(dtype):
    return max(8, 32 // jnp.dtype(dtype).itemsize)   # 8 for f32, 16 for bf16


def nonlinear_neck(x, params, *, compute_dtype=None, tn=512, tk=None):
    """x: (B, in_dim). params: dict from init_params (optionally run through
    prepare_params for a bf16 weight store).

    compute_dtype defaults to the stored weight dtype; bf16 runs both matmuls
    in bf16 on the MXU (f32 accumulation, f32 BN/ReLU) and stores the
    inter-layer activation in bf16 (intentional, not bit-exact vs f32).
    Linear biases (params['b1']/['b2']) are intentionally unused: they are
    exactly cancelled by the following batch-statistics BatchNorm."""
    out_dtype = x.dtype
    w1, w2 = params["w1t"], params["w2t"]
    if compute_dtype is None:
        compute_dtype = w1.dtype
    if w1.dtype != compute_dtype:     # no-op when prepare_params was used
        w1 = w1.astype(compute_dtype)
        w2 = w2.astype(compute_dtype)
    if tk is None:
        tk = 2048 if jnp.dtype(compute_dtype).itemsize <= 2 else 1024

    B = x.shape[0]
    sub = _sublane(compute_dtype)
    B_pad = -(-B // sub) * sub
    xc = x.astype(compute_dtype)
    if B_pad != B:
        xc = jnp.pad(xc, ((0, B_pad - B), (0, 0)))

    a1 = _linear_bn_relu(xc, w1, params["g1"], params["be1"],
                         out_dtype=compute_dtype, b_real=B,
                         tn_pref=tn, tk_pref=tk)
    out = _linear_bn_relu(a1, w2, params["g2"], params["be2"],
                          out_dtype=out_dtype, b_real=B,
                          tn_pref=tn, tk_pref=tk)
    return out[:B] if B_pad != B else out


# ----------------------------------------------------------------------------
# Params / reference / test
# ----------------------------------------------------------------------------

def init_params(key, in_dim, hidden_dim):
    """Deterministic synthetic init matching nn.Linear / nn.BatchNorm1d shapes.
    Linear weights are stored pre-transposed: (in_dim, hidden), (hidden, hidden)."""
    k1, k2, k3, k4 = jax.random.split(key, 4)
    bound1 = 1.0 / jnp.sqrt(in_dim)
    bound2 = 1.0 / jnp.sqrt(hidden_dim)
    w1t = jax.random.uniform(k1, (in_dim, hidden_dim), jnp.float32, -bound1, bound1)
    b1 = jax.random.uniform(k2, (1, hidden_dim), jnp.float32, -bound1, bound1)
    w2t = jax.random.uniform(k3, (hidden_dim, hidden_dim), jnp.float32, -bound2, bound2)
    b2 = jax.random.uniform(k4, (1, hidden_dim), jnp.float32, -bound2, bound2)
    # BatchNorm1d affine params: gamma=1, beta=0 (PyTorch default init).
    g1 = jnp.ones((1, hidden_dim), jnp.float32)
    be1 = jnp.zeros((1, hidden_dim), jnp.float32)
    g2 = jnp.ones((1, hidden_dim), jnp.float32)
    be2 = jnp.zeros((1, hidden_dim), jnp.float32)
    return dict(w1t=w1t, b1=b1, g1=g1, be1=be1,
                w2t=w2t, b2=b2, g2=g2, be2=be2)


def _reference(x, p):
    """Pure-JAX reference with full PyTorch semantics (including the Linear
    biases, which the kernel drops because batch-stat BN cancels them)."""
    h1 = x @ p["w1t"] + p["b1"]
    mu, var = h1.mean(0), h1.var(0)
    h1 = (h1 - mu) / jnp.sqrt(var + EPS) * p["g1"] + p["be1"]
    a1 = jnp.maximum(h1, 0.0)
    h2 = a1 @ p["w2t"] + p["b2"]
    mu, var = h2.mean(0), h2.var(0)
    h2 = (h2 - mu) / jnp.sqrt(var + EPS) * p["g2"] + p["be2"]
    return jnp.maximum(h2, 0.0)


if __name__ == "__main__":
    key = jax.random.PRNGKey(0)
    kx, kp = jax.random.split(key)

    B, in_dim, hidden_dim = 8, 16, 32
    x = jax.random.normal(kx, (B, in_dim), jnp.float32)
    params = init_params(kp, in_dim, hidden_dim)

    ref = _reference(x, params)

    # f32 path: strict check against the reference (with biases) -- verifies
    # the resident-x tiled structure and the bias-cancellation identity.
    out = jax.block_until_ready(nonlinear_neck(x, params))
    assert out.shape == (B, hidden_dim)
    assert jnp.allclose(out, ref, atol=1e-4, rtol=1e-4), "f32 mismatch vs reference"

    # bf16 path with pre-converted (stored) bf16 weights; B=8 is padded to the
    # 16-row bf16 sublane multiple, exercising the masked-BN epilogue.
    params_bf16 = prepare_params(params, jnp.bfloat16)
    out_bf16 = jax.block_until_ready(
        nonlinear_neck(x, params_bf16, compute_dtype=jnp.bfloat16))
    assert out_bf16.shape == (B, hidden_dim)
    assert bool(jnp.all(jnp.isfinite(out_bf16)))
    assert float(jnp.max(jnp.abs(out_bf16.astype(jnp.float32) - ref))) < 0.25, \
        "bf16 path diverged"

    # Odd batch (not a sublane multiple) in f32: padding + masked BN stats.
    B_odd = 5
    x_odd = jax.random.normal(kx, (B_odd, in_dim), jnp.float32)
    ref_odd = _reference(x_odd, params)
    out_odd = jax.block_until_ready(nonlinear_neck(x_odd, params))
    assert out_odd.shape == (B_odd, hidden_dim)
    assert jnp.allclose(out_odd, ref_odd, atol=1e-4, rtol=1e-4), \
        "padded-batch mismatch vs reference"

    print("KERNEL_OK")
</pallas_src>

<mosaic_0001>
module attributes {stable_mosaic.version = 11 : i64} {
  func.func @kernel(%arg0: i32, %arg1: i32, %arg2: memref<8x16xf32, #tpu.memory_space<vmem>>, %arg3: memref<16x32xf32, #tpu.memory_space<vmem>>, %arg4: memref<1x32xf32, #tpu.memory_space<vmem>>, %arg5: memref<1x32xf32, #tpu.memory_space<vmem>>, %arg6: memref<8x32xf32, #tpu.memory_space<vmem>>, %arg7: memref<8x32xf32, #tpu.memory_space<vmem>>) attributes {dimension_semantics = [#tpu.dimension_semantics<parallel>, #tpu.dimension_semantics<arbitrary>], iteration_bounds = array<i64: 1, 1>, scalar_prefetch = 0 : i64, scratch_operands = 1 : i64, tpu.core_type = #tpu.core_type<tc>, window_params = [{pipeline_mode = #tpu.pipeline_mode<synchronous>, transform_indices = @transform_0, window_bounds = array<i64: 8, 16>}, {transform_indices = @transform_1, window_bounds = array<i64: 16, 32>}, {transform_indices = @transform_2, window_bounds = array<i64: 1, 32>}, {transform_indices = @transform_3, window_bounds = array<i64: 1, 32>}, {transform_indices = @transform_4, window_bounds = array<i64: 8, 32>}]} {
    %c0_i32 = arith.constant 0 : i32
    %0 = arith.cmpi eq, %arg1, %c0_i32 : i32
    %1 = arith.extui %0 : i1 to i32
    %c0_i32_0 = arith.constant 0 : i32
    %2 = arith.cmpi ne, %1, %c0_i32_0 : i32
    scf.if %2 {
      %cst_10 = arith.constant 0.000000e+00 : f32
      %12 = vector.broadcast %cst_10 : f32 to vector<8x32xf32>
      %c0_11 = arith.constant 0 : index
      %c0_12 = arith.constant 0 : index
      %13 = vector.load %arg7[%c0_11, %c0_12] : memref<8x32xf32, #tpu.memory_space<vmem>>, vector<8x32xf32>
      tpu.vector_store %arg7[%c0_11, %c0_12], %12 {strides = array<i32>} : memref<8x32xf32, #tpu.memory_space<vmem>>, vector<8x32xf32>,
    } else {
    }
    %c0 = arith.constant 0 : index
    %c0_1 = arith.constant 0 : index
    %3 = vector.load %arg2[%c0, %c0_1] : memref<8x16xf32, #tpu.memory_space<vmem>>, vector<8x16xf32>
    %c0_2 = arith.constant 0 : index
    %c0_3 = arith.constant 0 : index
    %4 = vector.load %arg7[%c0_2, %c0_3] : memref<8x32xf32, #tpu.memory_space<vmem>>, vector<8x32xf32>
    %c0_4 = arith.constant 0 : index
    %c0_5 = arith.constant 0 : index
    %5 = vector.load %arg3[%c0_4, %c0_5] : memref<16x32xf32, #tpu.memory_space<vmem>>, vector<16x32xf32>
    %cst = arith.constant dense<0.000000e+00> : vector<8x32xf32>
    %6 = tpu.matmul %3, %5, %cst {dimension_numbers = #tpu.dot_dimension_numbers<[1], [0], [0], [1], [0, 0, 1, 1], [], []>} : vector<8x16xf32>, vector<16x32xf32>, vector<8x32xf32> -> vector<8x32xf32>
    %7 = arith.addf %4, %6 : vector<8x32xf32>
    %c0_6 = arith.constant 0 : index
    %c0_7 = arith.constant 0 : index
    %8 = vector.load %arg7[%c0_6, %c0_7] : memref<8x32xf32, #tpu.memory_space<vmem>>, vector<8x32xf32>
    tpu.vector_store %arg7[%c0_6, %c0_7], %7 {strides = array<i32>} : memref<8x32xf32, #tpu.memory_space<vmem>>, vector<8x32xf32>,
    %c0_i32_8 = arith.constant 0 : i32
    %9 = arith.cmpi eq, %arg1, %c0_i32_8 : i32
    %10 = arith.extui %9 : i1 to i32
    %c0_i32_9 = arith.constant 0 : i32
    %11 = arith.cmpi ne, %10, %c0_i32_9 : i32
    scf.if %11 {
      %c0_10 = arith.constant 0 : index
      %c0_11 = arith.constant 0 : index
      %12 = vector.load %arg7[%c0_10, %c0_11] : memref<8x32xf32, #tpu.memory_space<vmem>>, vector<8x32xf32>
      %cst_12 = arith.constant dense<0.000000e+00> : vector<32xf32>
      %13 = vector.multi_reduction <add>, %12, %cst_12 [0] : vector<8x32xf32> to vector<32xf32>
      %14 = vector.shape_cast %13 : vector<32xf32> to vector<1x32xf32>
      %cst_13 = arith.constant 8.000000e+00 : f32
      %15 = vector.broadcast %cst_13 : f32 to vector<1x32xf32>
      %16 = arith.divf %14, %15 : vector<1x32xf32>
      %17 = vector.broadcast %16 : vector<1x32xf32> to vector<8x32xf32>
      %18 = arith.subf %12, %17 : vector<8x32xf32>
      %19 = arith.mulf %18, %18 : vector<8x32xf32>
      %cst_14 = arith.constant dense<0.000000e+00> : vector<32xf32>
      %20 = vector.multi_reduction <add>, %19, %cst_14 [0] : vector<8x32xf32> to vector<32xf32>
      %21 = vector.shape_cast %20 : vector<32xf32> to vector<1x32xf32>
      %cst_15 = arith.constant 8.000000e+00 : f32
      %22 = vector.broadcast %cst_15 : f32 to vector<1x32xf32>
      %23 = arith.divf %21, %22 : vector<1x32xf32>
      %c0_16 = arith.constant 0 : index
      %c0_17 = arith.constant 0 : index
      %24 = vector.load %arg4[%c0_16, %c0_17] : memref<1x32xf32, #tpu.memory_space<vmem>>, vector<1x32xf32>
      %cst_18 = arith.constant 9.99999974E-6 : f32
      %25 = vector.broadcast %cst_18 : f32 to vector<1x32xf32>
      %26 = arith.addf %23, %25 : vector<1x32xf32>
      %27 = math.rsqrt %26 : vector<1x32xf32>
      %28 = arith.mulf %24, %27 : vector<1x32xf32>
      %c0_19 = arith.constant 0 : index
      %c0_20 = arith.constant 0 : index
      %29 = vector.load %arg5[%c0_19, %c0_20] : memref<1x32xf32, #tpu.memory_space<vmem>>, vector<1x32xf32>
      %30 = arith.mulf %16, %28 : vector<1x32xf32>
      %31 = arith.subf %29, %30 : vector<1x32xf32>
      %32 = vector.broadcast %28 : vector<1x32xf32> to vector<8x32xf32>
      %33 = arith.mulf %12, %32 : vector<8x32xf32>
      %34 = vector.broadcast %31 : vector<1x32xf32> to vector<8x32xf32>
      %35 = arith.addf %33, %34 : vector<8x32xf32>
      %cst_21 = arith.constant 0.000000e+00 : f32
      %36 = vector.broadcast %cst_21 : f32 to vector<8x32xf32>
      %37 = arith.maximumf %35, %36 : vector<8x32xf32>
      %c0_22 = arith.constant 0 : index
      %c0_23 = arith.constant 0 : index
      %38 = vector.load %arg6[%c0_22, %c0_23] : memref<8x32xf32, #tpu.memory_space<vmem>>, vector<8x32xf32>
      tpu.vector_store %arg6[%c0_22, %c0_23], %37 {strides = array<i32>} : memref<8x32xf32, #tpu.memory_space<vmem>>, vector<8x32xf32>,
    } else {
    }
    return
  }
  func.func @transform_0(%arg0: i32, %arg1: i32) -> (i32, i32) {
    %c0_i32 = arith.constant 0 : i32
    %c0_i32_0 = arith.constant 0 : i32
    %c0_i32_1 = arith.constant 0 : i32
    return %c0_i32, %c0_i32_0 : i32, i32
  }
  func.func @transform_1(%arg0: i32, %arg1: i32) -> (i32, i32) {
    %c0_i32 = arith.constant 0 : i32
    return %arg1, %arg0 : i32, i32
  }
  func.func @transform_2(%arg0: i32, %arg1: i32) -> (i32, i32) {
    %c0_i32 = arith.constant 0 : i32
    %c0_i32_0 = arith.constant 0 : i32
    return %c0_i32, %arg0 : i32, i32
  }
  func.func @transform_3(%arg0: i32, %arg1: i32) -> (i32, i32) {
    %c0_i32 = arith.constant 0 : i32
    %c0_i32_0 = arith.constant 0 : i32
    return %c0_i32, %arg0 : i32, i32
  }
  func.func @transform_4(%arg0: i32, %arg1: i32) -> (i32, i32) {
    %c0_i32 = arith.constant 0 : i32
    %c0_i32_0 = arith.constant 0 : i32
    return %c0_i32, %arg0 : i32, i32
  }
}

</mosaic_0001>

<bundles_post_ra>
// kernel: tpu_custom_call.1
= control target key start
LH: loop header
LB: loop body
LE: loop exit
PB: predicated region body
PF: predicated region fallthrough
CT: control target
= control target key end

     0   :  { %9 = vsyncpa [#allocation4], 0  ;;  %s376_s0 = inlined_call_operand.hbm [shape: f32[8,16], index: 0, kind: input, shape index: {}]   ;;  %s377_s1 = inlined_call_operand.hbm [shape: f32[16,32], index: 1, kind: input, shape index: {}]   ;;  %s378_s2 = inlined_call_operand.vmem [shape: f32[1,32], index: 2, kind: input, shape index: {}]   ;;  %s379_s3 = inlined_call_operand.vmem [shape: f32[1,32], index: 3, kind: input, shape index: {}]   ;;  %s380_s4 = inlined_call_operand.hbm [shape: f32[8,32], index: 4, kind: output, shape index: {}]  }
   0x1   :  { %10 = vsyncpa [#allocation7], 0 }
   0x2   :  { %11 = vsyncpa [#allocation5], 0  ;;  %s289_s15 = smov [#allocation3]   ;;  %s290_s17 = smov [#allocation6]  }
   0x3   :  { %s18_s16 = sshll.u32 %s289_s15, 4  ;;  %s27_s18 = sshll.u32 %s290_s17, 4  ;;  %s19_s16 = int_to_ptr.vmem [resolvable:$true] %s18_s16  ;;  %s322_s18 = int_to_ptr.vmem [resolvable:$true] %s27_s18 }
   0x4   :  { %s217_s21 = scalar_lea.hbm %s376_s0, 128 }
   0x5   :  { %p218_p0 = scmp.ne.s32.totalorder %s376_s0, %s217_s21  ;;  %p221_p1 = scmp.lt.u32.totalorder %s217_s21, %s376_s0 }
   0x7   :  { %p223_p2 = pnand %p221_p1, %p218_p0 }
   0x9   :  { %226 = shalt.err (!%p223_p2)
}
   0xa   :  { %s227_s26 = scalar_lea.vmem %s19_s16, 128  ;;  %p232_p4 = scmp.lt.s32.totalorder %s19_s16, %s19_s16 }
   0xb   :  { %p228_p3 = scmp.ne.s32.totalorder %s19_s16, %s227_s26  ;;  %p233_p5 = scmp.lt.s32.totalorder %s227_s26, %s227_s26 }
   0xd   :  { %p234_p6 = por %p233_p5, %p232_p4 }
   0xf   :  { %p235_p7 = pnand %p234_p6, %p228_p3 }
  0x11   :  { %238 = shalt.err (!%p235_p7)
}
  0x12   :  { %21 = dma.hbm_to_vmem [thread:$0]  %s376_s0, 128, %s19_s16, [#allocation4]  }
  0x13   :  { %s239_s5 = scalar_lea.hbm %s377_s1, 256 }
  0x14   :  { %p240_p8 = scmp.ne.s32.totalorder %s377_s1, %s239_s5  ;;  %p243_p9 = scmp.lt.u32.totalorder %s239_s5, %s377_s1 }
  0x16   :  { %p245_p10 = pnand %p243_p9, %p240_p8 }
  0x18   :  { %248 = shalt.err (!%p245_p10)
}
  0x19   :  { %s249_s10 = scalar_lea.vmem %s322_s18, 256  ;;  %p254_p12 = scmp.lt.s32.totalorder %s322_s18, %s322_s18 }
  0x1a   :  { %p250_p11 = scmp.ne.s32.totalorder %s322_s18, %s249_s10  ;;  %p255_p13 = scmp.lt.s32.totalorder %s249_s10, %s249_s10 }
  0x1c   :  { %p256_p0 = por %p255_p13, %p254_p12 }
  0x1e   :  { %p257_p1 = pnand %p256_p0, %p250_p11 }
  0x20   :  { %260 = shalt.err (!%p257_p1)
}
  0x21   :  { %s291_s0 = smov 128   ;;  %s292_s11 = smov 8  }
  0x22   :  { %33 = dma.hbm_to_vmem [thread:$0]  %s377_s1, 256, %s322_s18, [#allocation7], %s291_s0, %s291_s0, %s292_s11  }
  0x23   :  { %283 = dma.done.wait [#allocation4], 128  }
  0x24   :  { %284 = vsyncadd [#allocation4], 4294967168 }
  0x25   :  { %285 = dma.done.wait [#allocation7], 256  }
  0x26   :  { %286 = vsyncadd [#allocation7], 4294967040  ;;  %vm48_vm0 = vcmask 261120   ;;  %v293_v0 = vmov 0.0|0.0   ;;  %v294_v1 = vmov 0.0   ;;  %vm295_vm1 = vmmov 0  }
  0x27   :  { %204 = vmatprep.subr.bf16.mxu0 %v293_v0  ;;  %49 = vst.msk [vmem:[#allocation2] sm:$0xff] %vm48_vm0, %v294_v1  ;;  %201 = vmatprep.mubr.msk.f32.mxu0 %vm295_vm1, %v294_v1  ;;  %v52_v2 = vld [vmem:[#allocation6] sm:$0xff]  ;;  %v53_v3 = vld [vmem:[#allocation6 + $0x8] sm:$0xff]  ;;  %v50_v5 = vld [vmem:[#allocation3] sm:$0xff]  ;;  %vm54_vm2 = vcmask 130048   ;;  %v162_v30 = vlaneseq  ;;  %s296_s17 = smov [#allocation8]  }
  0x28   :  { %v205_v4 = vpack.c.bf16 %v53_v3, %v52_v2  ;;  %v154_v32 = vld [vmem:[%s378_s2] sm:$0x1]  ;;  %s183_s18 = sshll.u32 %s296_s17, 4  ;;  %s184_s18 = int_to_ptr.vmem [resolvable:$true] %s183_s18 }
  0x29   :  { %v163_v31 = vshrl.u32 %v162_v30, 7  ;;  %v158_v36 = vld [vmem:[%s379_s3] sm:$0x1]  ;;  %s261_s2 = scalar_lea.vmem %s184_s18, 128  ;;  %p266_p3 = scmp.lt.s32.totalorder %s184_s18, %s184_s18 }
  0x2a   :  { %206 = vmatpush3.bf16.msra.mxu0 %v205_v4  ;;  %p262_p2 = scmp.ne.s32.totalorder %s184_s18, %s261_s2  ;;  %p267_p4 = scmp.lt.s32.totalorder %s261_s2, %s261_s2 }
  0x2b   :  { %v164_v33 = vsub.s32 0, %v163_v31 }
  0x2c   :  { %p268_p5 = por %p267_p4, %p266_p3 }
  0x2d   :  { %202 = vmatmul.mubr.msk.f32.vlgmr.msra.gmra.mrb[0].mxu0 %vm54_vm2, %v50_v5 }
  0x2e   :  { %v51_v6 = vld [vmem:[#allocation2] sm:$0xff]  ;;  %p269_p6 = pnand %p268_p5, %p262_p2 }
 0x100   :  { %v124_v7 = vpop.f32.mrb[0].mxu0 }
 0x101   :  { %v128_v8 = vadd.f32 %v124_v7, %v51_v6  ;;  %v203_v9 = vpop.f32.mrb[1].mxu0 }
 0x103   :  { %130 = vst.msk [vmem:[#allocation2] sm:$0xff] %vm48_vm0, %v128_v8 }
 0x10a   :  { %v134_v10 = vld [vmem:[#allocation2] sm:$0xff] }
 0x10b   :  { %v135_v11 = vsel %vm48_vm0, %v134_v10, 0.0 }
 0x10c   :  { %v136_v12 = vrot.slane %v135_v11, 4 }
 0x10e   :  { %v137_v13 = vadd.f32 %v136_v12, %v135_v11 }
 0x110   :  { %v138_v14 = vrot.slane %v137_v13, 2 }
 0x112   :  { %v139_v15 = vadd.f32 %v138_v14, %v137_v13 }
 0x114   :  { %v140_v16 = vrot.slane %v139_v15, 1 }
 0x116   :  { %v141_v17 = vadd.f32 %v140_v16, %v139_v15 }
 0x118   :  { %v143_v18 = vmul.f32 0.125, %v141_v17 }
 0x11a   :  { %v144_v19 = vsub.f32 %v134_v10, %v143_v18 }
 0x11c   :  { %v145_v20 = vmul.f32 %v144_v19, %v144_v19 }
 0x11e   :  { %v146_v21 = vsel %vm48_vm0, %v145_v20, 0.0 }
 0x11f   :  { %v147_v22 = vrot.slane %v146_v21, 4 }
 0x121   :  { %v148_v23 = vadd.f32 %v147_v22, %v146_v21 }
 0x123   :  { %v149_v24 = vrot.slane %v148_v23, 2 }
 0x125   :  { %v150_v25 = vadd.f32 %v149_v24, %v148_v23 }
 0x127   :  { %v151_v26 = vrot.slane %v150_v25, 1 }
 0x129   :  { %v152_v27 = vadd.f32 %v151_v26, %v150_v25 }
 0x12b   :  { %v153_v28 = vmul.f32 0.125, %v152_v27 }
 0x12d   :  { %v155_v29 = vadd.f32 1e-05, %v153_v28 }
 0x12f   :  { %215 = vrsqrt.f32 %v155_v29 }
 0x139   :  { %v216_v34 = vpop.eup %215 }
 0x13a   :  { %v157_v35 = vmul.f32 %v216_v34, %v154_v32 }
 0x13c   :  { %v159_v37 = vmul.f32 %v157_v35, %v143_v18  ;;  %v165_v38 = vrot.slane %v157_v35, %v164_v33 }
 0x13e   :  { %v160_v39 = vsub.f32 %v158_v36, %v159_v37  ;;  %v167_v40 = vmul.f32 %v165_v38, %v134_v10 }
 0x140   :  { %v172_v41 = vrot.slane %v160_v39, %v164_v33 }
 0x142   :  { %v174_v42 = vadd.f32 %v172_v41, %v167_v40 }
 0x144   :  { %v175_v43 = vmax.f32 %v174_v42, 0.0 }
 0x146   :  { %176 = vst.msk [vmem:[#allocation8] sm:$0xff] %vm48_vm0, %v175_v43 }
 0x147   :  { %272 = shalt.err (!%p269_p6)
}
 0x148   :  { %s273_s20 = scalar_lea.hbm %s380_s4, 128 }
 0x149   :  { %p274_p7 = scmp.ne.s32.totalorder %s380_s4, %s273_s20  ;;  %p277_p8 = scmp.lt.u32.totalorder %s273_s20, %s380_s4 }
 0x14b   :  { %p279_p9 = pnand %p277_p8, %p274_p7 }
 0x14d   :  { %282 = shalt.err (!%p279_p9)
}
 0x14e   :  { %186 = dma.vmem_to_hbm [thread:$0]  %s184_s18, 128, %s380_s4, [#allocation5]  }
 0x14f   :  { %287 = dma.done.wait [#allocation5], 128  }
 0x150   :  { %288 = vsyncadd [#allocation5], 4294967168 }
 0x151   :  { %190 = vsyncpa [#allocation4], 1 }
 0x152   :  { %191 = vsyncpa [#allocation7], 1 }
 0x153   :  { %192 = vsyncpa [#allocation5], 1 }

</bundles_post_ra>
